<compile_context>
chip_gen: v5e
topology: v5e:2x2
jax: 0.10.0
libtpu: 0.0.40
codegen_flags: <defaults>
</compile_context>

<pallas_src>
import jax
import jax.numpy as jnp
from jax.experimental import pallas as pl
from jax.experimental.pallas import tpu as pltpu


def _round_up(n, m):
    return ((n + m - 1) // m) * m


def _pad_to(a, shape):
    return jnp.pad(a, [(0, t - s) for s, t in zip(a.shape, shape)])


_WEIGHT_ORDER = ['pool', 'bcast', 'g1', 'b1', 'wt1', 'bt1', 'wt2', 'bt2',
                 'g2', 'b2', 'wf1', 'bf1', 'wf2', 'bf2', 'whd', 'bhd']


# ----------------------------------------------------------------------------
# Fused kernel: TSMixer (2x group-LayerNorm + 2x MLP) + fused N-BEATS heads.
# Everything operates on the flat, lane-padded (TB, L_pad) layout.
# ----------------------------------------------------------------------------
def generic_block_kernel(x_ref,
                         pool_ref, bcast_ref, g1_ref, b1_ref,
                         wt1_ref, bt1_ref, wt2_ref, bt2_ref,
                         g2_ref, b2_ref, wf1_ref, bf1_ref, wf2_ref, bf2_ref,
                         whd_ref, bhd_ref,
                         out_b_ref, out_f_ref):
    eps = 1e-5
    f32 = jnp.float32
    bf16 = jnp.bfloat16

    x = x_ref[...]                       # (TB, L_pad) f32
    pool = pool_ref[...]                 # (L_pad, P8)  f32 per-patch averaging
    bcast = bcast_ref[...]               # (P8, L_pad)  f32 per-patch broadcast

    def group_layernorm(v, g, b):
        # Per-patch statistics in f32 via factored pooling matmuls.
        mu = jnp.dot(jnp.dot(v, pool, preferred_element_type=f32), bcast,
                     preferred_element_type=f32)
        c = v - mu                       # centered -> numerically stable var
        var = jnp.dot(jnp.dot(c * c, pool, preferred_element_type=f32), bcast,
                      preferred_element_type=f32)
        var = jnp.maximum(var, 0.0)
        return c * jax.lax.rsqrt(var + eps) * g + b

    def mlp(v, w1_ref, b1, w2_ref, b2):
        # bf16 operands on the MXU, f32 accumulation / bias add.
        h = jnp.maximum(
            jnp.dot(v.astype(bf16), w1_ref[...], preferred_element_type=f32)
            + b1, 0.0)
        return (jnp.dot(h.astype(bf16), w2_ref[...], preferred_element_type=f32)
                + b2)

    # ---- time-mixing branch (mix across num_patches; block-expanded weights)
    xn = group_layernorm(x, g1_ref[...], b1_ref[...])
    x = x + mlp(xn, wt1_ref, bt1_ref[...], wt2_ref, bt2_ref[...])

    # ---- feature-mixing branch (mix across patch_size; block-expanded weights)
    xn = group_layernorm(x, g2_ref[...], b2_ref[...])
    x = x + mlp(xn, wf1_ref, bf1_ref[...], wf2_ref, bf2_ref[...])

    # ---- fused N-BEATS heads: one lane-dense matmul -> [backcast | forecast]
    slab = (jnp.dot(x.astype(bf16), whd_ref[...], preferred_element_type=f32)
            + bhd_ref[...])                              # (TB, BP + FP)
    bp = out_b_ref.shape[-1]                             # multiple of 128
    out_b_ref[...] = slab[:, :bp]
    out_f_ref[...] = slab[:, bp:]


# ----------------------------------------------------------------------------
# Wrapper: single pallas_call, grid over batch, resident weights.
# ----------------------------------------------------------------------------
def generic_block_forward(packed, x, *, backcast_length, forecast_length,
                          batch_tile=1024):
    B, L = x.shape
    assert L == backcast_length
    F = forecast_length

    L_pad = int(packed['whd'].shape[0])
    O_pad = int(packed['whd'].shape[1])
    BP = _round_up(L, 128)
    FP = O_pad - BP
    SH_pad = int(packed['wt1'].shape[1])
    PH_pad = int(packed['wf1'].shape[1])
    P8 = int(packed['pool'].shape[1])

    # Pad the input to the lane-aligned flat length (zeros never leak: all
    # packed weights have zero rows/cols in the padded region).
    xp = x if L_pad == L else jnp.pad(x, ((0, 0), (0, L_pad - L)))

    # ---- batch tile selection: big tiles, but >=2 grid steps (v7x megacore).
    if B <= 8:
        tb = B
    else:
        tb = min(batch_tile, max(8, _round_up((B + 1) // 2, 8)))
        tb = min(tb, _round_up(B, 8))

    weights = [packed[k] for k in _WEIGHT_ORDER]

    # ---- honest VMEM budget, capped by the actual device capacity.
    try:
        vmem_cap = int(pltpu.get_tpu_info().vmem_capacity_bytes)
    except Exception:
        vmem_cap = 64 << 20                     # conservative (v7x)
    vmem_avail = min(vmem_cap - (8 << 20), int(0.85 * vmem_cap))

    # Default BlockSpec pipelining double-buffers every input, weights too.
    w_bytes = 2 * sum(int(w.size) * w.dtype.itemsize for w in weights)

    def _needed(t):
        io = 2 * t * (L_pad + BP + FP) * 4                        # dbl-buffered I/O
        act = t * (6 * L_pad + SH_pad + PH_pad + (BP + FP)) * 4   # live intermediates
        return w_bytes + io + act + (2 << 20)

    while tb > 8 and _needed(tb) > vmem_avail:
        tb = max(8, _round_up(tb // 2, 8))
    vmem_limit = int(min(max(_needed(tb), 32 << 20), vmem_avail))

    grid = (pl.cdiv(B, tb),)

    def resident_spec(arr):
        zeros = (0,) * arr.ndim                 # constant index_map -> VMEM resident
        return pl.BlockSpec(arr.shape, lambda *_: zeros)

    # ---- advisory cost estimate for the XLA scheduler.
    flops_per_row = (16 * L_pad * P8                       # 2 LN x (mu,var) x 2 dots
                     + 4 * L_pad * (SH_pad + PH_pad)       # two mixing MLPs
                     + 2 * L_pad * (BP + FP))              # fused head
    cost = pl.CostEstimate(
        flops=int(B * flops_per_row),
        transcendentals=int(2 * B * L_pad),
        bytes_accessed=int(xp.size * 4
                           + sum(int(w.size) * w.dtype.itemsize for w in weights)
                           + B * (BP + FP) * 4))

    out_b, out_f = pl.pallas_call(
        generic_block_kernel,
        out_shape=(jax.ShapeDtypeStruct((B, BP), jnp.float32),
                   jax.ShapeDtypeStruct((B, FP), jnp.float32)),
        grid=grid,
        in_specs=([pl.BlockSpec((tb, L_pad), lambda i: (i, 0))]
                  + [resident_spec(w) for w in weights]),
        out_specs=(pl.BlockSpec((tb, BP), lambda i: (i, 0)),
                   pl.BlockSpec((tb, FP), lambda i: (i, 0))),
        compiler_params=pltpu.CompilerParams(
            dimension_semantics=("parallel",),
            vmem_limit_bytes=vmem_limit),
        cost_estimate=cost,
    )(xp, *weights)

    return out_b[:, :L], out_f[:, :F]


# ----------------------------------------------------------------------------
# Parameter packing: lane-padded, block-expanded, bf16 matmul weights.
# ----------------------------------------------------------------------------
def pack_params(params, *, num_patches, patch_size, hidden_dim, thetas_dim,
                backcast_length, forecast_length):
    P, S, H = num_patches, patch_size, hidden_dim
    L, F = backcast_length, forecast_length
    assert L == P * S
    f32, bf16 = jnp.float32, jnp.bfloat16

    L_pad = _round_up(L, 128)
    SH_pad = _round_up(S * H, 128)
    PH_pad = _round_up(P * H, 128)
    P8 = _round_up(P, 8)
    BP = _round_up(L, 128)
    FP = _round_up(F, 128)

    eyeS = jnp.eye(S, dtype=f32)
    eyeP = jnp.eye(P, dtype=f32)

    pk = {}
    # Factored per-patch averaging: mean = (x @ pool) @ bcast  (flat l = p*S+s)
    pk['pool'] = _pad_to(jnp.kron(eyeP, jnp.full((S, 1), 1.0 / S, f32)), (L_pad, P8))
    pk['bcast'] = _pad_to(jnp.kron(eyeP, jnp.ones((1, S), f32)), (P8, L_pad))
    # LayerNorm gamma/beta tiled over patches; padded lanes get gamma=0/beta=0
    # (harmless: centered value is 0 there).
    pk['g1'] = _pad_to(jnp.tile(params['ln1_g'], P)[None, :], (1, L_pad))
    pk['b1'] = _pad_to(jnp.tile(params['ln1_b'], P)[None, :], (1, L_pad))
    pk['g2'] = _pad_to(jnp.tile(params['ln2_g'], P)[None, :], (1, L_pad))
    pk['b2'] = _pad_to(jnp.tile(params['ln2_b'], P)[None, :], (1, L_pad))
    # Time-mixing MLP expanded to flat layout (hidden flat index m = s*H + h)
    wt1 = jnp.einsum('ph,su->psuh', params['tw1'], eyeS).reshape(P * S, S * H)
    wt2 = jnp.einsum('hp,su->shpu', params['tw2'], eyeS).reshape(S * H, P * S)
    pk['wt1'] = _pad_to(wt1, (L_pad, SH_pad)).astype(bf16)
    pk['bt1'] = _pad_to(jnp.tile(params['tb1'], S)[None, :], (1, SH_pad))
    pk['wt2'] = _pad_to(wt2, (SH_pad, L_pad)).astype(bf16)
    pk['bt2'] = _pad_to(jnp.repeat(params['tb2'], S)[None, :], (1, L_pad))
    # Feature-mixing MLP expanded to flat layout (hidden flat index m = p*H + h)
    wf1 = jnp.einsum('pq,sh->psqh', eyeP, params['fw1']).reshape(P * S, P * H)
    wf2 = jnp.einsum('pq,hs->phqs', eyeP, params['fw2']).reshape(P * H, P * S)
    pk['wf1'] = _pad_to(wf1, (L_pad, PH_pad)).astype(bf16)
    pk['bf1'] = _pad_to(jnp.tile(params['fb1'], P)[None, :], (1, PH_pad))
    pk['wf2'] = _pad_to(wf2, (PH_pad, L_pad)).astype(bf16)
    pk['bf2'] = _pad_to(jnp.tile(params['fb2'], P)[None, :], (1, L_pad))
    # Fused heads: W_head = theta_proj @ head_proj, laid out [backcast | forecast]
    wb_full = params['wtb'] @ params['wb']       # (L, L)
    wf_full = params['wtf'] @ params['wf']       # (L, F)
    whd = jnp.zeros((L_pad, BP + FP), f32)
    whd = whd.at[:L, :L].set(wb_full)
    whd = whd.at[:L, BP:BP + F].set(wf_full)
    pk['whd'] = whd.astype(bf16)
    bhd = jnp.zeros((1, BP + FP), f32)
    bhd = bhd.at[0, :L].set(params['bb'])
    bhd = bhd.at[0, BP:BP + F].set(params['bf'])
    pk['bhd'] = bhd
    return pk


# ----------------------------------------------------------------------------
# Deterministic "natural" parameter init (weights stored as (in, out) == W.T)
# ----------------------------------------------------------------------------
def init_params(key, *, patch_size, num_patches, hidden_dim, thetas_dim,
                backcast_length, forecast_length):
    ks = jax.random.split(key, 14)
    s = 0.1
    f32 = jnp.float32
    p = {}
    # TSMixer layernorms (PyTorch defaults gamma=1, beta=0), normalized over patch_size
    p['ln1_g'] = jnp.ones((patch_size,), f32)
    p['ln1_b'] = jnp.zeros((patch_size,), f32)
    p['ln2_g'] = jnp.ones((patch_size,), f32)
    p['ln2_b'] = jnp.zeros((patch_size,), f32)
    # Time-mixing MLP: Linear(num_patches, hidden) -> ReLU -> Linear(hidden, num_patches)
    p['tw1'] = s * jax.random.normal(ks[0], (num_patches, hidden_dim), f32)
    p['tb1'] = s * jax.random.normal(ks[1], (hidden_dim,), f32)
    p['tw2'] = s * jax.random.normal(ks[2], (hidden_dim, num_patches), f32)
    p['tb2'] = s * jax.random.normal(ks[3], (num_patches,), f32)
    # Feature-mixing MLP: Linear(patch_size, hidden) -> ReLU -> Linear(hidden, patch_size)
    p['fw1'] = s * jax.random.normal(ks[4], (patch_size, hidden_dim), f32)
    p['fb1'] = s * jax.random.normal(ks[5], (hidden_dim,), f32)
    p['fw2'] = s * jax.random.normal(ks[6], (hidden_dim, patch_size), f32)
    p['fb2'] = s * jax.random.normal(ks[7], (patch_size,), f32)
    # N-BEATS generic heads
    p['wtb'] = s * jax.random.normal(ks[8], (backcast_length, thetas_dim), f32)
    p['wtf'] = s * jax.random.normal(ks[9], (backcast_length, thetas_dim), f32)
    p['wb'] = s * jax.random.normal(ks[10], (thetas_dim, backcast_length), f32)
    p['bb'] = s * jax.random.normal(ks[11], (backcast_length,), f32)
    p['wf'] = s * jax.random.normal(ks[12], (thetas_dim, forecast_length), f32)
    p['bf'] = s * jax.random.normal(ks[13], (forecast_length,), f32)
    return p


# ----------------------------------------------------------------------------
# Pure-JAX reference (naive formulation) used as a correctness sanity check.
# ----------------------------------------------------------------------------
def reference_forward(params, x, *, num_patches, patch_size):
    eps = 1e-5
    B, L = x.shape
    P, S = num_patches, patch_size
    x3 = x.reshape(B, P, S)

    def ln(v, g, b):
        mu = jnp.mean(v, -1, keepdims=True)
        var = jnp.mean((v - mu) ** 2, -1, keepdims=True)
        return (v - mu) * jax.lax.rsqrt(var + eps) * g + b

    xn = ln(x3, params['ln1_g'], params['ln1_b'])
    ht = jnp.maximum(jnp.einsum('bps,ph->bsh', xn, params['tw1']) + params['tb1'], 0.0)
    t = jnp.einsum('bsh,hp->bps', ht, params['tw2']) + params['tb2'][:, None]
    x3 = x3 + t

    xn = ln(x3, params['ln2_g'], params['ln2_b'])
    fh = jnp.maximum(jnp.einsum('bps,sh->bph', xn, params['fw1']) + params['fb1'], 0.0)
    f = jnp.einsum('bph,hs->bps', fh, params['fw2']) + params['fb2']
    x3 = x3 + f

    xm = x3.reshape(B, L)
    theta_b = xm @ params['wtb']
    theta_f = xm @ params['wtf']
    backcast = theta_b @ params['wb'] + params['bb']
    forecast = theta_f @ params['wf'] + params['bf']
    return backcast, forecast


if __name__ == "__main__":
    # Small shapes consistent with the module (backcast_length = num_patches * patch_size)
    B = 16
    patch_size = 8
    num_patches = 4
    backcast_length = patch_size * num_patches     # 32
    forecast_length = 8
    hidden_dim = 16
    thetas_dim = 8

    root = jax.random.PRNGKey(0)
    pkey, xkey = jax.random.split(root)
    params = init_params(pkey,
                         patch_size=patch_size, num_patches=num_patches,
                         hidden_dim=hidden_dim, thetas_dim=thetas_dim,
                         backcast_length=backcast_length,
                         forecast_length=forecast_length)
    packed = pack_params(params,
                         num_patches=num_patches, patch_size=patch_size,
                         hidden_dim=hidden_dim, thetas_dim=thetas_dim,
                         backcast_length=backcast_length,
                         forecast_length=forecast_length)

    x = jax.random.normal(xkey, (B, backcast_length), jnp.float32)

    backcast, forecast = generic_block_forward(
        packed, x, backcast_length=backcast_length,
        forecast_length=forecast_length)
    jax.block_until_ready((backcast, forecast))

    assert backcast.shape == (B, backcast_length)
    assert forecast.shape == (B, forecast_length)

    # Numerical sanity check against the naive pure-JAX f32 reference
    # (kernel uses bf16 matmul operands, hence ~1e-2 tolerance).
    ref_b, ref_f = reference_forward(params, x,
                                     num_patches=num_patches,
                                     patch_size=patch_size)
    assert jnp.allclose(backcast, ref_b, atol=1e-2, rtol=1e-2)
    assert jnp.allclose(forecast, ref_f, atol=1e-2, rtol=1e-2)

    print("KERNEL_OK")
</pallas_src>

<mosaic_0001>
module attributes {stable_mosaic.version = 11 : i64} {
  func.func @generic_block_kernel(%arg0: i32, %arg1: memref<8x128xf32, #tpu.memory_space<vmem>>, %arg2: memref<128x8xf32, #tpu.memory_space<vmem>>, %arg3: memref<8x128xf32, #tpu.memory_space<vmem>>, %arg4: memref<1x128xf32, #tpu.memory_space<vmem>>, %arg5: memref<1x128xf32, #tpu.memory_space<vmem>>, %arg6: memref<128x128xbf16, #tpu.memory_space<vmem>>, %arg7: memref<1x128xf32, #tpu.memory_space<vmem>>, %arg8: memref<128x128xbf16, #tpu.memory_space<vmem>>, %arg9: memref<1x128xf32, #tpu.memory_space<vmem>>, %arg10: memref<1x128xf32, #tpu.memory_space<vmem>>, %arg11: memref<1x128xf32, #tpu.memory_space<vmem>>, %arg12: memref<128x128xbf16, #tpu.memory_space<vmem>>, %arg13: memref<1x128xf32, #tpu.memory_space<vmem>>, %arg14: memref<128x128xbf16, #tpu.memory_space<vmem>>, %arg15: memref<1x128xf32, #tpu.memory_space<vmem>>, %arg16: memref<128x256xbf16, #tpu.memory_space<vmem>>, %arg17: memref<1x256xf32, #tpu.memory_space<vmem>>, %arg18: memref<8x128xf32, #tpu.memory_space<vmem>>, %arg19: memref<8x128xf32, #tpu.memory_space<vmem>>) attributes {dimension_semantics = [#tpu.dimension_semantics<parallel>], iteration_bounds = array<i64: 2>, scalar_prefetch = 0 : i64, scratch_operands = 0 : i64, tpu.core_type = #tpu.core_type<tc>, window_params = [{transform_indices = @transform_0, window_bounds = array<i64: 8, 128>}, {pipeline_mode = #tpu.pipeline_mode<synchronous>, transform_indices = @transform_1, window_bounds = array<i64: 128, 8>}, {pipeline_mode = #tpu.pipeline_mode<synchronous>, transform_indices = @transform_2, window_bounds = array<i64: 8, 128>}, {pipeline_mode = #tpu.pipeline_mode<synchronous>, transform_indices = @transform_3, window_bounds = array<i64: 1, 128>}, {pipeline_mode = #tpu.pipeline_mode<synchronous>, transform_indices = @transform_4, window_bounds = array<i64: 1, 128>}, {pipeline_mode = #tpu.pipeline_mode<synchronous>, transform_indices = @transform_5, window_bounds = array<i64: 128, 128>}, {pipeline_mode = #tpu.pipeline_mode<synchronous>, transform_indices = @transform_6, window_bounds = array<i64: 1, 128>}, {pipeline_mode = #tpu.pipeline_mode<synchronous>, transform_indices = @transform_7, window_bounds = array<i64: 128, 128>}, {pipeline_mode = #tpu.pipeline_mode<synchronous>, transform_indices = @transform_8, window_bounds = array<i64: 1, 128>}, {pipeline_mode = #tpu.pipeline_mode<synchronous>, transform_indices = @transform_9, window_bounds = array<i64: 1, 128>}, {pipeline_mode = #tpu.pipeline_mode<synchronous>, transform_indices = @transform_10, window_bounds = array<i64: 1, 128>}, {pipeline_mode = #tpu.pipeline_mode<synchronous>, transform_indices = @transform_11, window_bounds = array<i64: 128, 128>}, {pipeline_mode = #tpu.pipeline_mode<synchronous>, transform_indices = @transform_12, window_bounds = array<i64: 1, 128>}, {pipeline_mode = #tpu.pipeline_mode<synchronous>, transform_indices = @transform_13, window_bounds = array<i64: 128, 128>}, {pipeline_mode = #tpu.pipeline_mode<synchronous>, transform_indices = @transform_14, window_bounds = array<i64: 1, 128>}, {pipeline_mode = #tpu.pipeline_mode<synchronous>, transform_indices = @transform_15, window_bounds = array<i64: 128, 256>}, {pipeline_mode = #tpu.pipeline_mode<synchronous>, transform_indices = @transform_16, window_bounds = array<i64: 1, 256>}, {transform_indices = @transform_17, window_bounds = array<i64: 8, 128>}, {transform_indices = @transform_18, window_bounds = array<i64: 8, 128>}]} {
    %c0 = arith.constant 0 : index
    %c0_0 = arith.constant 0 : index
    %0 = vector.load %arg1[%c0, %c0_0] : memref<8x128xf32, #tpu.memory_space<vmem>>, vector<8x128xf32>
    %c0_1 = arith.constant 0 : index
    %c0_2 = arith.constant 0 : index
    %1 = vector.load %arg2[%c0_1, %c0_2] : memref<128x8xf32, #tpu.memory_space<vmem>>, vector<128x8xf32>
    %c0_3 = arith.constant 0 : index
    %c0_4 = arith.constant 0 : index
    %2 = vector.load %arg3[%c0_3, %c0_4] : memref<8x128xf32, #tpu.memory_space<vmem>>, vector<8x128xf32>
    %c0_5 = arith.constant 0 : index
    %c0_6 = arith.constant 0 : index
    %3 = vector.load %arg4[%c0_5, %c0_6] : memref<1x128xf32, #tpu.memory_space<vmem>>, vector<1x128xf32>
    %c0_7 = arith.constant 0 : index
    %c0_8 = arith.constant 0 : index
    %4 = vector.load %arg5[%c0_7, %c0_8] : memref<1x128xf32, #tpu.memory_space<vmem>>, vector<1x128xf32>
    %cst = arith.constant dense<0.000000e+00> : vector<8x8xf32>
    %5 = tpu.matmul %0, %1, %cst {dimension_numbers = #tpu.dot_dimension_numbers<[1], [0], [0], [1], [0, 0, 1, 1], [], []>} : vector<8x128xf32>, vector<128x8xf32>, vector<8x8xf32> -> vector<8x8xf32>
    %cst_9 = arith.constant dense<0.000000e+00> : vector<8x128xf32>
    %6 = tpu.matmul %5, %2, %cst_9 {dimension_numbers = #tpu.dot_dimension_numbers<[1], [0], [0], [1], [0, 0, 1, 1], [], []>} : vector<8x8xf32>, vector<8x128xf32>, vector<8x128xf32> -> vector<8x128xf32>
    %7 = arith.subf %0, %6 : vector<8x128xf32>
    %8 = arith.mulf %7, %7 : vector<8x128xf32>
    %cst_10 = arith.constant dense<0.000000e+00> : vector<8x8xf32>
    %9 = tpu.matmul %8, %1, %cst_10 {dimension_numbers = #tpu.dot_dimension_numbers<[1], [0], [0], [1], [0, 0, 1, 1], [], []>} : vector<8x128xf32>, vector<128x8xf32>, vector<8x8xf32> -> vector<8x8xf32>
    %cst_11 = arith.constant dense<0.000000e+00> : vector<8x128xf32>
    %10 = tpu.matmul %9, %2, %cst_11 {dimension_numbers = #tpu.dot_dimension_numbers<[1], [0], [0], [1], [0, 0, 1, 1], [], []>} : vector<8x8xf32>, vector<8x128xf32>, vector<8x128xf32> -> vector<8x128xf32>
    %cst_12 = arith.constant 0.000000e+00 : f32
    %11 = vector.broadcast %cst_12 : f32 to vector<8x128xf32>
    %12 = arith.maximumf %10, %11 : vector<8x128xf32>
    %cst_13 = arith.constant 9.99999974E-6 : f32
    %13 = vector.broadcast %cst_13 : f32 to vector<8x128xf32>
    %14 = arith.addf %12, %13 : vector<8x128xf32>
    %15 = math.rsqrt %14 : vector<8x128xf32>
    %16 = arith.mulf %7, %15 : vector<8x128xf32>
    %17 = vector.broadcast %3 : vector<1x128xf32> to vector<8x128xf32>
    %18 = arith.mulf %16, %17 : vector<8x128xf32>
    %19 = vector.broadcast %4 : vector<1x128xf32> to vector<8x128xf32>
    %20 = arith.addf %18, %19 : vector<8x128xf32>
    %c0_14 = arith.constant 0 : index
    %c0_15 = arith.constant 0 : index
    %21 = vector.load %arg7[%c0_14, %c0_15] : memref<1x128xf32, #tpu.memory_space<vmem>>, vector<1x128xf32>
    %c0_16 = arith.constant 0 : index
    %c0_17 = arith.constant 0 : index
    %22 = vector.load %arg9[%c0_16, %c0_17] : memref<1x128xf32, #tpu.memory_space<vmem>>, vector<1x128xf32>
    %23 = arith.truncf %20 : vector<8x128xf32> to vector<8x128xbf16>
    %c0_18 = arith.constant 0 : index
    %c0_19 = arith.constant 0 : index
    %24 = vector.load %arg6[%c0_18, %c0_19] : memref<128x128xbf16, #tpu.memory_space<vmem>>, vector<128x128xbf16>
    %cst_20 = arith.constant dense<0.000000e+00> : vector<8x128xf32>
    %25 = tpu.matmul %23, %24, %cst_20 {dimension_numbers = #tpu.dot_dimension_numbers<[1], [0], [0], [1], [0, 0, 1, 1], [], []>} : vector<8x128xbf16>, vector<128x128xbf16>, vector<8x128xf32> -> vector<8x128xf32>
    %26 = vector.broadcast %21 : vector<1x128xf32> to vector<8x128xf32>
    %27 = arith.addf %25, %26 : vector<8x128xf32>
    %cst_21 = arith.constant 0.000000e+00 : f32
    %28 = vector.broadcast %cst_21 : f32 to vector<8x128xf32>
    %29 = arith.maximumf %27, %28 : vector<8x128xf32>
    %30 = arith.truncf %29 : vector<8x128xf32> to vector<8x128xbf16>
    %c0_22 = arith.constant 0 : index
    %c0_23 = arith.constant 0 : index
    %31 = vector.load %arg8[%c0_22, %c0_23] : memref<128x128xbf16, #tpu.memory_space<vmem>>, vector<128x128xbf16>
    %cst_24 = arith.constant dense<0.000000e+00> : vector<8x128xf32>
    %32 = tpu.matmul %30, %31, %cst_24 {dimension_numbers = #tpu.dot_dimension_numbers<[1], [0], [0], [1], [0, 0, 1, 1], [], []>} : vector<8x128xbf16>, vector<128x128xbf16>, vector<8x128xf32> -> vector<8x128xf32>
    %33 = vector.broadcast %22 : vector<1x128xf32> to vector<8x128xf32>
    %34 = arith.addf %32, %33 : vector<8x128xf32>
    %35 = arith.addf %0, %34 : vector<8x128xf32>
    %c0_25 = arith.constant 0 : index
    %c0_26 = arith.constant 0 : index
    %36 = vector.load %arg10[%c0_25, %c0_26] : memref<1x128xf32, #tpu.memory_space<vmem>>, vector<1x128xf32>
    %c0_27 = arith.constant 0 : index
    %c0_28 = arith.constant 0 : index
    %37 = vector.load %arg11[%c0_27, %c0_28] : memref<1x128xf32, #tpu.memory_space<vmem>>, vector<1x128xf32>
    %cst_29 = arith.constant dense<0.000000e+00> : vector<8x8xf32>
    %38 = tpu.matmul %35, %1, %cst_29 {dimension_numbers = #tpu.dot_dimension_numbers<[1], [0], [0], [1], [0, 0, 1, 1], [], []>} : vector<8x128xf32>, vector<128x8xf32>, vector<8x8xf32> -> vector<8x8xf32>
    %cst_30 = arith.constant dense<0.000000e+00> : vector<8x128xf32>
    %39 = tpu.matmul %38, %2, %cst_30 {dimension_numbers = #tpu.dot_dimension_numbers<[1], [0], [0], [1], [0, 0, 1, 1], [], []>} : vector<8x8xf32>, vector<8x128xf32>, vector<8x128xf32> -> vector<8x128xf32>
    %40 = arith.subf %35, %39 : vector<8x128xf32>
    %41 = arith.mulf %40, %40 : vector<8x128xf32>
    %cst_31 = arith.constant dense<0.000000e+00> : vector<8x8xf32>
    %42 = tpu.matmul %41, %1, %cst_31 {dimension_numbers = #tpu.dot_dimension_numbers<[1], [0], [0], [1], [0, 0, 1, 1], [], []>} : vector<8x128xf32>, vector<128x8xf32>, vector<8x8xf32> -> vector<8x8xf32>
    %cst_32 = arith.constant dense<0.000000e+00> : vector<8x128xf32>
    %43 = tpu.matmul %42, %2, %cst_32 {dimension_numbers = #tpu.dot_dimension_numbers<[1], [0], [0], [1], [0, 0, 1, 1], [], []>} : vector<8x8xf32>, vector<8x128xf32>, vector<8x128xf32> -> vector<8x128xf32>
    %cst_33 = arith.constant 0.000000e+00 : f32
    %44 = vector.broadcast %cst_33 : f32 to vector<8x128xf32>
    %45 = arith.maximumf %43, %44 : vector<8x128xf32>
    %cst_34 = arith.constant 9.99999974E-6 : f32
    %46 = vector.broadcast %cst_34 : f32 to vector<8x128xf32>
    %47 = arith.addf %45, %46 : vector<8x128xf32>
    %48 = math.rsqrt %47 : vector<8x128xf32>
    %49 = arith.mulf %40, %48 : vector<8x128xf32>
    %50 = vector.broadcast %36 : vector<1x128xf32> to vector<8x128xf32>
    %51 = arith.mulf %49, %50 : vector<8x128xf32>
    %52 = vector.broadcast %37 : vector<1x128xf32> to vector<8x128xf32>
    %53 = arith.addf %51, %52 : vector<8x128xf32>
    %c0_35 = arith.constant 0 : index
    %c0_36 = arith.constant 0 : index
    %54 = vector.load %arg13[%c0_35, %c0_36] : memref<1x128xf32, #tpu.memory_space<vmem>>, vector<1x128xf32>
    %c0_37 = arith.constant 0 : index
    %c0_38 = arith.constant 0 : index
    %55 = vector.load %arg15[%c0_37, %c0_38] : memref<1x128xf32, #tpu.memory_space<vmem>>, vector<1x128xf32>
    %56 = arith.truncf %53 : vector<8x128xf32> to vector<8x128xbf16>
    %c0_39 = arith.constant 0 : index
    %c0_40 = arith.constant 0 : index
    %57 = vector.load %arg12[%c0_39, %c0_40] : memref<128x128xbf16, #tpu.memory_space<vmem>>, vector<128x128xbf16>
    %cst_41 = arith.constant dense<0.000000e+00> : vector<8x128xf32>
    %58 = tpu.matmul %56, %57, %cst_41 {dimension_numbers = #tpu.dot_dimension_numbers<[1], [0], [0], [1], [0, 0, 1, 1], [], []>} : vector<8x128xbf16>, vector<128x128xbf16>, vector<8x128xf32> -> vector<8x128xf32>
    %59 = vector.broadcast %54 : vector<1x128xf32> to vector<8x128xf32>
    %60 = arith.addf %58, %59 : vector<8x128xf32>
    %cst_42 = arith.constant 0.000000e+00 : f32
    %61 = vector.broadcast %cst_42 : f32 to vector<8x128xf32>
    %62 = arith.maximumf %60, %61 : vector<8x128xf32>
    %63 = arith.truncf %62 : vector<8x128xf32> to vector<8x128xbf16>
    %c0_43 = arith.constant 0 : index
    %c0_44 = arith.constant 0 : index
    %64 = vector.load %arg14[%c0_43, %c0_44] : memref<128x128xbf16, #tpu.memory_space<vmem>>, vector<128x128xbf16>
    %cst_45 = arith.constant dense<0.000000e+00> : vector<8x128xf32>
    %65 = tpu.matmul %63, %64, %cst_45 {dimension_numbers = #tpu.dot_dimension_numbers<[1], [0], [0], [1], [0, 0, 1, 1], [], []>} : vector<8x128xbf16>, vector<128x128xbf16>, vector<8x128xf32> -> vector<8x128xf32>
    %66 = vector.broadcast %55 : vector<1x128xf32> to vector<8x128xf32>
    %67 = arith.addf %65, %66 : vector<8x128xf32>
    %68 = arith.addf %35, %67 : vector<8x128xf32>
    %69 = arith.truncf %68 : vector<8x128xf32> to vector<8x128xbf16>
    %c0_46 = arith.constant 0 : index
    %c0_47 = arith.constant 0 : index
    %70 = vector.load %arg16[%c0_46, %c0_47] : memref<128x256xbf16, #tpu.memory_space<vmem>>, vector<128x256xbf16>
    %cst_48 = arith.constant dense<0.000000e+00> : vector<8x256xf32>
    %71 = tpu.matmul %69, %70, %cst_48 {dimension_numbers = #tpu.dot_dimension_numbers<[1], [0], [0], [1], [0, 0, 1, 1], [], []>} : vector<8x128xbf16>, vector<128x256xbf16>, vector<8x256xf32> -> vector<8x256xf32>
    %c0_49 = arith.constant 0 : index
    %c0_50 = arith.constant 0 : index
    %72 = vector.load %arg17[%c0_49, %c0_50] : memref<1x256xf32, #tpu.memory_space<vmem>>, vector<1x256xf32>
    %73 = vector.broadcast %72 : vector<1x256xf32> to vector<8x256xf32>
    %74 = arith.addf %71, %73 : vector<8x256xf32>
    %75 = vector.extract_strided_slice %74 {offsets = [0, 0], sizes = [8, 128], strides = [1, 1]} : vector<8x256xf32> to vector<8x128xf32>
    %c0_51 = arith.constant 0 : index
    %c0_52 = arith.constant 0 : index
    %76 = vector.load %arg18[%c0_51, %c0_52] : memref<8x128xf32, #tpu.memory_space<vmem>>, vector<8x128xf32>
    tpu.vector_store %arg18[%c0_51, %c0_52], %75 {strides = array<i32>} : memref<8x128xf32, #tpu.memory_space<vmem>>, vector<8x128xf32>,
    %77 = vector.extract_strided_slice %74 {offsets = [0, 128], sizes = [8, 128], strides = [1, 1]} : vector<8x256xf32> to vector<8x128xf32>
    %c0_53 = arith.constant 0 : index
    %c0_54 = arith.constant 0 : index
    %78 = vector.load %arg19[%c0_53, %c0_54] : memref<8x128xf32, #tpu.memory_space<vmem>>, vector<8x128xf32>
    tpu.vector_store %arg19[%c0_53, %c0_54], %77 {strides = array<i32>} : memref<8x128xf32, #tpu.memory_space<vmem>>, vector<8x128xf32>,
    return
  }
  func.func @transform_0(%arg0: i32) -> (i32, i32) {
    %c0_i32 = arith.constant 0 : i32
    %c0_i32_0 = arith.constant 0 : i32
    return %arg0, %c0_i32 : i32, i32
  }
  func.func @transform_1(%arg0: i32) -> (i32, i32) {
    %c0_i32 = arith.constant 0 : i32
    %c0_i32_0 = arith.constant 0 : i32
    %c0_i32_1 = arith.constant 0 : i32
    return %c0_i32, %c0_i32_0 : i32, i32
  }
  func.func @transform_2(%arg0: i32) -> (i32, i32) {
    %c0_i32 = arith.constant 0 : i32
    %c0_i32_0 = arith.constant 0 : i32
    %c0_i32_1 = arith.constant 0 : i32
    return %c0_i32, %c0_i32_0 : i32, i32
  }
  func.func @transform_3(%arg0: i32) -> (i32, i32) {
    %c0_i32 = arith.constant 0 : i32
    %c0_i32_0 = arith.constant 0 : i32
    %c0_i32_1 = arith.constant 0 : i32
    return %c0_i32, %c0_i32_0 : i32, i32
  }
  func.func @transform_4(%arg0: i32) -> (i32, i32) {
    %c0_i32 = arith.constant 0 : i32
    %c0_i32_0 = arith.constant 0 : i32
    %c0_i32_1 = arith.constant 0 : i32
    return %c0_i32, %c0_i32_0 : i32, i32
  }
  func.func @transform_5(%arg0: i32) -> (i32, i32) {
    %c0_i32 = arith.constant 0 : i32
    %c0_i32_0 = arith.constant 0 : i32
    %c0_i32_1 = arith.constant 0 : i32
    return %c0_i32, %c0_i32_0 : i32, i32
  }
  func.func @transform_6(%arg0: i32) -> (i32, i32) {
    %c0_i32 = arith.constant 0 : i32
    %c0_i32_0 = arith.constant 0 : i32
    %c0_i32_1 = arith.constant 0 : i32
    return %c0_i32, %c0_i32_0 : i32, i32
  }
  func.func @transform_7(%arg0: i32) -> (i32, i32) {
    %c0_i32 = arith.constant 0 : i32
    %c0_i32_0 = arith.constant 0 : i32
    %c0_i32_1 = arith.constant 0 : i32
    return %c0_i32, %c0_i32_0 : i32, i32
  }
  func.func @transform_8(%arg0: i32) -> (i32, i32) {
    %c0_i32 = arith.constant 0 : i32
    %c0_i32_0 = arith.constant 0 : i32
    %c0_i32_1 = arith.constant 0 : i32
    return %c0_i32, %c0_i32_0 : i32, i32
  }
  func.func @transform_9(%arg0: i32) -> (i32, i32) {
    %c0_i32 = arith.constant 0 : i32
    %c0_i32_0 = arith.constant 0 : i32
    %c0_i32_1 = arith.constant 0 : i32
    return %c0_i32, %c0_i32_0 : i32, i32
  }
  func.func @transform_10(%arg0: i32) -> (i32, i32) {
    %c0_i32 = arith.constant 0 : i32
    %c0_i32_0 = arith.constant 0 : i32
    %c0_i32_1 = arith.constant 0 : i32
    return %c0_i32, %c0_i32_0 : i32, i32
  }
  func.func @transform_11(%arg0: i32) -> (i32, i32) {
    %c0_i32 = arith.constant 0 : i32
    %c0_i32_0 = arith.constant 0 : i32
    %c0_i32_1 = arith.constant 0 : i32
    return %c0_i32, %c0_i32_0 : i32, i32
  }
  func.func @transform_12(%arg0: i32) -> (i32, i32) {
    %c0_i32 = arith.constant 0 : i32
    %c0_i32_0 = arith.constant 0 : i32
    %c0_i32_1 = arith.constant 0 : i32
    return %c0_i32, %c0_i32_0 : i32, i32
  }
  func.func @transform_13(%arg0: i32) -> (i32, i32) {
    %c0_i32 = arith.constant 0 : i32
    %c0_i32_0 = arith.constant 0 : i32
    %c0_i32_1 = arith.constant 0 : i32
    return %c0_i32, %c0_i32_0 : i32, i32
  }
  func.func @transform_14(%arg0: i32) -> (i32, i32) {
    %c0_i32 = arith.constant 0 : i32
    %c0_i32_0 = arith.constant 0 : i32
    %c0_i32_1 = arith.constant 0 : i32
    return %c0_i32, %c0_i32_0 : i32, i32
  }
  func.func @transform_15(%arg0: i32) -> (i32, i32) {
    %c0_i32 = arith.constant 0 : i32
    %c0_i32_0 = arith.constant 0 : i32
    %c0_i32_1 = arith.constant 0 : i32
    return %c0_i32, %c0_i32_0 : i32, i32
  }
  func.func @transform_16(%arg0: i32) -> (i32, i32) {
    %c0_i32 = arith.constant 0 : i32
    %c0_i32_0 = arith.constant 0 : i32
    %c0_i32_1 = arith.constant 0 : i32
    return %c0_i32, %c0_i32_0 : i32, i32
  }
  func.func @transform_17(%arg0: i32) -> (i32, i32) {
    %c0_i32 = arith.constant 0 : i32
    %c0_i32_0 = arith.constant 0 : i32
    return %arg0, %c0_i32 : i32, i32
  }
  func.func @transform_18(%arg0: i32) -> (i32, i32) {
    %c0_i32 = arith.constant 0 : i32
    %c0_i32_0 = arith.constant 0 : i32
    return %arg0, %c0_i32 : i32, i32
  }
}

</mosaic_0001>

<bundles_post_ra>
// kernel: tpu_custom_call.1
= control target key start
LH: loop header
LB: loop body
LE: loop exit
PB: predicated region body
PF: predicated region fallthrough
CT: control target
= control target key end

     0   :  { %s3032_s0 = inlined_call_operand.vmem [shape: f32[16,128], index: 0, kind: input, shape index: {}]   ;;  %s3033_s1 = inlined_call_operand.vmem [shape: f32[128,8], index: 1, kind: input, shape index: {}]   ;;  %s3034_s2 = inlined_call_operand.hbm [shape: f32[8,128], index: 2, kind: input, shape index: {}]   ;;  %s3035_s3 = inlined_call_operand.vmem [shape: f32[1,128], index: 3, kind: input, shape index: {}]   ;;  %s3036_s4 = inlined_call_operand.vmem [shape: f32[1,128], index: 4, kind: input, shape index: {}]   ;;  %s3037_s5 = inlined_call_operand.hbm [shape: bf16[128,128], index: 5, kind: input, shape index: {}]   ;;  %s3038_s6 = inlined_call_operand.vmem [shape: f32[1,128], index: 6, kind: input, shape index: {}]   ;;  %s3039_s7 = inlined_call_operand.hbm [shape: bf16[128,128], index: 7, kind: input, shape index: {}]   ;;  %s3040_s8 = inlined_call_operand.vmem [shape: f32[1,128], index: 8, kind: input, shape index: {}]   ;;  %s3041_s9 = inlined_call_operand.hbm [shape: f32[1,128], index: 9, kind: input, shape index: {}]   ;;  %s3042_s10 = inlined_call_operand.hbm [shape: f32[1,128], index: 10, kind: input, shape index: {}]   ;;  %s3043_s11 = inlined_call_operand.hbm [shape: bf16[128,128], index: 11, kind: input, shape index: {}]   ;;  %s3044_s12 = inlined_call_operand.hbm [shape: f32[1,128], index: 12, kind: input, shape index: {}]   ;;  %s3045_s13 = inlined_call_operand.hbm [shape: bf16[128,128], index: 13, kind: input, shape index: {}]   ;;  %s3046_s14 = inlined_call_operand.hbm [shape: f32[1,128], index: 14, kind: input, shape index: {}]   ;;  %s3047_s15 = inlined_call_operand.vmem [shape: bf16[128,256], index: 15, kind: input, shape index: {}]   ;;  %s3048_s16 = inlined_call_operand.vmem [shape: f32[1,256], index: 16, kind: input, shape index: {}]   ;;  %s3049_s17 = inlined_call_operand.hbm [shape: f32[16,128], index: 17, kind: output, shape index: {0}]   ;;  %s3050_s18 = inlined_call_operand.hbm [shape: f32[16,128], index: 18, kind: output, shape index: {1}]  }
   0x1   :  { %3062 = sst [smem:[#allocation34_spill]] %s3032_s0 }
   0x2   :  { %3063 = sst [smem:[#allocation35_spill]] %s3033_s1 }
   0x3   :  { %3064 = sst [smem:[#allocation36_spill]] %s3034_s2 }
   0x4   :  { %3065 = sst [smem:[#allocation37_spill]] %s3035_s3 }
   0x5   :  { %3066 = sst [smem:[#allocation38_spill]] %s3036_s4 }
   0x6   :  { %3067 = sst [smem:[#allocation39_spill]] %s3037_s5 }
   0x7   :  { %3068 = sst [smem:[#allocation40_spill]] %s3038_s6 }
   0x8   :  { %3069 = sst [smem:[#allocation41_spill]] %s3041_s9 }
   0x9   :  { %3070 = sst [smem:[#allocation42_spill]] %s3049_s17 }
   0xa   :  { %3071 = sst [smem:[#allocation43_spill]] %s3050_s18 }
   0xb   :  { %24 = vsyncpa [#allocation3], 0 }
   0xc   :  { %25 = vsyncpa [#allocation6], 0 }
   0xd   :  { %26 = vsyncpa [#allocation9], 0 }
   0xe   :  { %27 = vsyncpa [#allocation12], 0 }
   0xf   :  { %28 = vsyncpa [#allocation15], 0 }
  0x10   :  { %29 = vsyncpa [#allocation4], 0 }
  0x11   :  { %31 = vsyncpa [#allocation4 + $0x1], 0 }
  0x12   :  { %32 = vsyncpa [#allocation19], 0 }
  0x13   :  { %34 = vsyncpa [#allocation19 + $0x1], 0  ;;  %s2556_s27 = smov 0   ;;  %s2558_s28 = smov 0  }
  0x14   :  { %s2560_s29 = smov 0   ;;  %s2562_s30 = smov 0  }
  0x15 LB: > { %3072 = sst [smem:[#allocation27_spill]] %s2436_s27  ;;  %s2577_s0 = sadd.s32 4294967295, %s2448_s30   ;;  %s2448_s30 = sphi %s2562_s30, %s3098_s30   ;;  %s2444_s29 = sphi %s2560_s29, %s3100_s29   ;;  %s2440_s28 = sphi %s2558_s28, %s3102_s28   ;;  %s2436_s27 = sphi %s2556_s27, %s3101_s27  }
  0x16   : > { %3073 = sst [smem:[#allocation28_spill]] %s2444_s29  ;;  %s1640_s19 = sadd.s32 4294967294, %s2448_s30  }
  0x17   : > { %3074 = sst [smem:[#allocation29_spill]] %s2448_s30  ;;  %s2581_s1 = sadd.s32 1, %s2448_s30  }
  0x18   : > { %3075 = sst [smem:[#allocation30_spill]] %s2581_s1  ;;  %s409_s20 = sadd.s32 1, %s2444_s29 }
  0x19   : > { %s406_s21 = ssub.s32 %s2448_s30, %s2581_s1  ;;  %p419_p0 = scmp.ne.s32.totalorder %s2444_s29, %s2440_s28 }
  0x1a   : > { %p407_p1 = scmp.eq.s32.totalorder %s406_s21, 0  ;;  %p420_p2 = scmp.eq.s32.totalorder %s2577_s0, 1 }
  0x1b   : > { %p425_p3 = scmp.ne.s32.totalorder %s2440_s28, %s2436_s27  ;;  %p426_p4 = scmp.eq.s32.totalorder %s1640_s19, 1 }
  0x1c   : > { %s2592_s22 = scalar_select %p407_p1, %s2444_s29, %s409_s20  }
  0x1d   : > { %p2594_p5 = por %p420_p2, %p419_p0  ;;  %p2598_p6 = por %p426_p4, %p425_p3 }
  0x1e   : > { %3076 = sst [smem:[#allocation31_spill]] %s2592_s22  ;;  %p1641_p7 = scmp.ge.s32.totalorder %s2448_s30, 1 }
  0x1f   : > { %s3077_s2 = scalar_select %p2594_p5, 1, 0 }
  0x20   : > { %s3079_s23 = scalar_select %p2598_p6, 1, 0 }
  0x21   : > { %3078 = sst [smem:[#allocation32_spill]] %s3077_s2  ;;  %p459_p8 = scmp.lt.s32.totalorder %s2448_s30, 3 }
  0x22   : > { %3080 = sst [smem:[#allocation33_spill]] %s3079_s23  ;;  %p1990_p9 = scmp.eq.s32.totalorder %s2577_s0, 0 }
  0x23   : > { %p2605_p10 = pnand %p1641_p7, %p459_p8  ;;  %s3082_s5 = sld [smem:[#allocation39_spill]] }
  0x24   : > { %s2450_s20 = smov [#allocation5]   ;;  %s3084_s9 = sld [smem:[#allocation41_spill]] }
  0x25   : > { %p1955_p11 = pneg %p2605_p10  ;;  %s493_s21 = sshll.u32 %s2450_s20, 4  ;;  %s494_s21 = int_to_ptr.vmem [resolvable:$true] %s493_s21 }
  0x26   : > { %s2451_s25 = smov 64   ;;  %s2452_s26 = smov 4  }
  0x27   : > { %p2616_p12 = pnand %p1990_p9, %p1955_p11  ;;  %s2453_s20 = smov [#allocation8]  }
  0x28   : > { %s549_s2 = sshll.u32 %s3043_s11, 4  ;;  %s2454_s18 = smov [#allocation11]   ;;  %s550_s2 = int_to_ptr.hbm [resolvable:$true] %s549_s2 }
  0x29   : > { %s491_s19 = sshll.u32 %s3082_s5, 4  ;;  %s528_s5 = sshll.u32 %s2453_s20, 4  ;;  %s492_s19 = int_to_ptr.hbm [resolvable:$true] %s491_s19  ;;  %s529_s5 = int_to_ptr.vmem [resolvable:$true] %s528_s5 }
  0x2a   : > { %s526_s23 = sshll.u32 %s3084_s9, 4  ;;  %s575_s9 = sshll.u32 %s3045_s13, 4  ;;  %s527_s23 = int_to_ptr.hbm [resolvable:$true] %s526_s23  ;;  %s576_s9 = int_to_ptr.hbm [resolvable:$true] %s575_s9 }
  0x2b   : > { %1961 = dma.hbm_to_vmem [thread:$0]  (!%p2616_p12), %s492_s19, 1024, %s494_s21, [#allocation6], %s2451_s25, %s2451_s25, %s2452_s26  }
  0x2c   : > { %1967 = dma.hbm_to_vmem [thread:$0]  (!%p2616_p12), %s527_s23, 16, %s529_s5, [#allocation9]  }
  0x2d   : > { %s551_s17 = sshll.u32 %s2454_s18, 4  ;;  %s2455_s27 = smov [#allocation14]   ;;  %s552_s17 = int_to_ptr.vmem [resolvable:$true] %s551_s17 }
  0x2e   : > { %1973 = dma.hbm_to_vmem [thread:$0]  (!%p2616_p12), %s550_s2, 1024, %s552_s17, [#allocation12], %s2451_s25, %s2451_s25, %s2452_s26  }
  0x2f   : > { %s577_s30 = sshll.u32 %s2455_s27, 4  ;;  %s3085_s20 = sld [smem:[#allocation36_spill]]  ;;  %s578_s30 = int_to_ptr.vmem [resolvable:$true] %s577_s30 }
  0x30   : > { %1979 = dma.hbm_to_vmem [thread:$0]  (!%p2616_p12), %s576_s9, 1024, %s578_s30, [#allocation15], %s2451_s25, %s2451_s25, %s2452_s26  }
  0x31   : > { %s508_s29 = sshll.u32 %s3039_s7, 4  ;;  %s2456_s1 = smov [#allocation2]   ;;  %s509_s29 = int_to_ptr.hbm [resolvable:$true] %s508_s29 }
  0x32   : > { %s476_s17 = sshll.u32 %s2456_s1, 4  ;;  %s2457_s2 = smov [#allocation7]   ;;  %s477_s17 = int_to_ptr.vmem [resolvable:$true] %s476_s17 }
  0x33   : > { %s510_s27 = sshll.u32 %s2457_s2, 4  ;;  %s564_s18 = sshll.u32 %s3044_s12, 4  ;;  %s511_s27 = int_to_ptr.vmem [resolvable:$true] %s510_s27  ;;  %s565_s18 = int_to_ptr.hbm [resolvable:$true] %s564_s18 }
  0x34   : > { %1964 = dma.hbm_to_vmem [thread:$0]  (!%p2616_p12), %s509_s29, 1024, %s511_s27, [#allocation6], %s2451_s25, %s2451_s25, %s2452_s26  }
  0x35   : > { %s474_s5 = sshll.u32 %s3085_s20, 4  ;;  %s538_s20 = sshll.u32 %s3042_s10, 4  ;;  %s475_s5 = int_to_ptr.hbm [resolvable:$true] %s474_s5  ;;  %s539_s20 = int_to_ptr.hbm [resolvable:$true] %s538_s20 }
  0x36   : > { %1958 = dma.hbm_to_vmem [thread:$0]  (!%p2616_p12), %s475_s5, 128, %s477_s17, [#allocation3]  }
  0x37   : > { %s2458_s5 = smov [#allocation10]   ;;  %s2459_s1 = smov [#allocation13]  }
  0x38   : > { %s540_s23 = sshll.u32 %s2458_s5, 4  ;;  %s566_s17 = sshll.u32 %s2459_s1, 4  ;;  %s541_s23 = int_to_ptr.vmem [resolvable:$true] %s540_s23  ;;  %s567_s17 = int_to_ptr.vmem [resolvable:$true] %s566_s17 }
  0x39   : > { %1970 = dma.hbm_to_vmem [thread:$0]  (!%p2616_p12), %s539_s20, 16, %s541_s23, [#allocation9]  }
  0x3a   : > { %s590_s21 = sshll.u32 %s3046_s14, 4  ;;  %s2460_s25 = smov [#allocation16]   ;;  %s591_s21 = int_to_ptr.hbm [resolvable:$true] %s590_s21 }
  0x3b   : > { %1976 = dma.hbm_to_vmem [thread:$0]  (!%p2616_p12), %s565_s18, 16, %s567_s17, [#allocation12]  }
  0x3c   : > { %s592_s26 = sshll.u32 %s2460_s25, 4  ;;  %618 = sbr.rel (%p2605_p10) target bundleno = 1906 (0x772), region = 88  ;;  %s593_s26 = int_to_ptr.vmem [resolvable:$true] %s592_s26 }
  0x3d   : > { %1982 = dma.hbm_to_vmem [thread:$0]  (!%p2616_p12), %s591_s21, 16, %s593_s26, [#allocation15]  }
  0x41   : > { %2407 = dma.done.wait (%p1990_p9), [#allocation3], 128  }
  0x42   : > { %2409 = vsyncadd (%p1990_p9), [#allocation3], 4294967168 }
  0x43   : > { %2411 = dma.done.wait (%p1990_p9), [#allocation6], 2048  }
  0x44   : > { %2413 = vsyncadd (%p1990_p9), [#allocation6], 4294965248 }
  0x45   : > { %2415 = dma.done.wait (%p1990_p9), [#allocation9], 32  }
  0x46   : > { %2417 = vsyncadd (%p1990_p9), [#allocation9], 4294967264 }
  0x47   : > { %2419 = dma.done.wait (%p1990_p9), [#allocation12], 1040  }
  0x48   : > { %2421 = vsyncadd (%p1990_p9), [#allocation12], 4294966256 }
  0x49   : > { %2423 = dma.done.wait (%p1990_p9), [#allocation15], 1040  }
  0x4a   : > { %2425 = vsyncadd (%p1990_p9), [#allocation15], 4294966256  ;;  %s3086_s29 = sld [smem:[#allocation35_spill]]  ;;  %p717_p13 = scmp.lt.s32.totalorder %s2577_s0, 1  ;;  %v738_v17 = vld [vmem:[#allocation2] sm:$0xff]  ;;  %vm761_vm0 = vcmask 64512  }
  0x4b   : > { %s3088_s27 = sld [smem:[#allocation34_spill]]  ;;  %780 = vmatpush.msra.mxu3 %v738_v17  ;;  %v1874_v23 = vld [vmem:[#allocation5 + $0x38] sm:$0xff]  ;;  %v1873_v24 = vld [vmem:[#allocation5 + $0x30] sm:$0xff]  ;;  %v1872_v25 = vld [vmem:[#allocation5 + $0x28] sm:$0xff]  ;;  %s2973_s26 = sand.u32 1, %s2440_s28  }
  0x4c   : > { %s718_s5 = scalar_select %p717_p13, %s2577_s0, 1  ;;  %921 = vmatpush.bf16.msra.mxu1 %v1874_v23  ;;  %v1871_v26 = vld [vmem:[#allocation5 + $0x20] sm:$0xff]  ;;  %v1870_v27 = vld [vmem:[#allocation5 + $0x18] sm:$0xff]  ;;  %v1869_v28 = vld [vmem:[#allocation5 + $0x10] sm:$0xff] }
  0x4d   : > { %825 = vmatpush.msrb.mxu3 %v738_v17  ;;  %v1868_v29 = vld [vmem:[#allocation5 + $0x8] sm:$0xff]  ;;  %v1867_v30 = vld [vmem:[#allocation5] sm:$0xff]  ;;  %v1882_v31 = vld [vmem:[#allocation7 + $0x38] sm:$0xff]  ;;  %s3089_s3 = sld [smem:[#allocation37_spill]]  ;;  %s1863_s22 = sshll.u32 %s2577_s0, 3 }
  0x4e   : > { %s1664_s19 = sshll.u32 %s718_s5, 3  ;;  %v1881_v34 = vld [vmem:[#allocation7 + $0x30] sm:$0xff]  ;;  %v1880_v36 = vld [vmem:[#allocation7 + $0x28] sm:$0xff]  ;;  %v1879_v37 = vld [vmem:[#allocation7 + $0x20] sm:$0xff]  ;;  %s3090_s4 = sld [smem:[#allocation38_spill]] }
  0x4f   : > { %v1878_v40 = vld [vmem:[#allocation7 + $0x18] sm:$0xff]  ;;  %v1877_v43 = vld [vmem:[#allocation7 + $0x10] sm:$0xff]  ;;  %v1876_v53 = vld [vmem:[#allocation7 + $0x8] sm:$0xff]  ;;  %s3091_s6 = sld [smem:[#allocation40_spill]]  ;;  %s1662_s24 = sshll.u32 %s2973_s26, 3 }
  0x50   : > { %s3087_s20 = smov %s3086_s29  ;;  %v2699_v0 = vld [vmem:[%s3086_s29 + $0x78] sm:$0xff]  ;;  %922 = vmatpush.bf16.msra.mxu1 %v1873_v24  ;;  %v1875_v54 = vld [vmem:[#allocation7] sm:$0xff]  ;;  %v2055_v61 = vld [vmem:[%s3040_s8] ss:$0 sm:$0xff]  ;;  %s3092_s18 = sld [smem:[#allocation42_spill]] }
  0x51   : > { %v2704_v1 = vld [vmem:[%s3087_s20 + $0x70] sm:$0xff]  ;;  %741 = vmatpush.msra.mxu0 %v2699_v0  ;;  %787 = vmatpush.msra.mxu2 %v2699_v0  ;;  %v2711_v2 = vld [vmem:[%s3087_s20 + $0x68] sm:$0xff]  ;;  %v2718_v3 = vld [vmem:[%s3087_s20 + $0x60] sm:$0xff]  ;;  %s720_s9 = scalar_lea.vmem %s3088_s27, %s1664_s19  ;;  %s3093_s17 = sld [smem:[#allocation43_spill]] }
  0x52   : > { %v2724_v4 = vld [vmem:[%s3087_s20 + $0x58] sm:$0xff]  ;;  %v2732_v5 = vld [vmem:[%s3087_s20 + $0x50] sm:$0xff]  ;;  %v2739_v6 = vld [vmem:[%s3087_s20 + $0x48] sm:$0xff]  ;;  %s709_s19 = scalar_lea.vmem [#allocation17], %s1662_s24  ;;  %s716_s0 = scalar_lea.vmem [#allocation18], %s1662_s24 }
  0x53   : > { %742 = vmatpush.msra.mxu0 %v2704_v1  ;;  %788 = vmatpush.msra.mxu2 %v2704_v1  ;;  %v2746_v7 = vld [vmem:[%s3087_s20 + $0x40] sm:$0xff]  ;;  %v2753_v8 = vld [vmem:[%s3087_s20 + $0x38] sm:$0xff]  ;;  %v2761_v9 = vld [vmem:[%s3087_s20 + $0x30] sm:$0xff]  ;;  %s1443_s21 = sshll.u32 %s709_s19, 4  ;;  %s1444_s21 = int_to_ptr.vmem [resolvable:$true] %s1443_s21 }
  0x54   : > { %v2768_v10 = vld [vmem:[%s3087_s20 + $0x28] sm:$0xff]  ;;  %v2776_v11 = vld [vmem:[%s3087_s20 + $0x20] sm:$0xff]  ;;  %v2783_v12 = vld [vmem:[%s3087_s20 + $0x18] sm:$0xff]  ;;  %923 = vmatpush.bf16.msra.mxu1 %v1872_v25 }
  0x55   : > { %743 = vmatpush.msra.mxu0 %v2711_v2  ;;  %789 = vmatpush.msra.mxu2 %v2711_v2  ;;  %v2790_v13 = vld [vmem:[%s3087_s20 + $0x10] sm:$0xff]  ;;  %v2797_v14 = vld [vmem:[%s3087_s20 + $0x8] sm:$0xff]  ;;  %v2807_v15 = vld [vmem:[%s3087_s20] sm:$0xff] }
  0x56   : > { %v2810_v16 = vld [vmem:[%s720_s9] sm:$0xff]  ;;  %s1441_s5 = scalar_lea.hbm %s3092_s18, %s1863_s22  ;;  %s2354_s30 = scalar_lea.hbm %s3092_s18, 16 }
  0x57   : > { %744 = vmatpush.msra.mxu0 %v2718_v3  ;;  %790 = vmatpush.msra.mxu2 %v2718_v3  ;;  %v2052_v46 = vld [vmem:[%s3089_s3] ss:$0 sm:$0xff]  ;;  %v1894_v24 = vld [vmem:[#allocation14 + $0x18] sm:$0xff]  ;;  %s1455_s2 = scalar_lea.hbm %s3093_s17, %s1863_s22  ;;  %s1445_s25 = sshll.u32 %s1441_s5, 4  ;;  %s1446_s25 = int_to_ptr.hbm [resolvable:$true] %s1445_s25 }
  0x58   : > { %924 = vmatpush.bf16.msra.mxu1 %v1871_v26  ;;  %v2053_v49 = vld [vmem:[%s3090_s4] ss:$0 sm:$0xff]  ;;  %s1457_s3 = sshll.u32 %s716_s0, 4  ;;  %s1459_s4 = sshll.u32 %s1455_s2, 4  ;;  %s2986_s3 = int_to_ptr.vmem [resolvable:$true] %s1457_s3  ;;  %s2988_s4 = int_to_ptr.hbm [resolvable:$true] %s1459_s4 }
  0x59   : > { %745 = vmatpush.msra.mxu0 %v2724_v4  ;;  %791 = vmatpush.msra.mxu2 %v2724_v4  ;;  %v2054_v55 = vld [vmem:[%s3091_s6] ss:$0 sm:$0xff]  ;;  %s1426_s22 = scalar_lea.sflag [#allocation4], %s2973_s26  ;;  %s2348_s29 = sshra.s32 %s1446_s25, 4  ;;  %s2349_s29 = int_to_ptr.hbm [resolvable:$true] %s2348_s29 }
  0x5a   : > { %s2350_s27 = scalar_lea.hbm %s2349_s29, 8  ;;  %p2355_p3 = scmp.lt.s32.totalorder %s2349_s29, %s3092_s18 }
  0x5b   : > { %746 = vmatpush.msra.mxu0 %v2732_v5  ;;  %792 = vmatpush.msra.mxu2 %v2732_v5  ;;  %p2351_p0 = scmp.ne.s32.totalorder %s2349_s29, %s2350_s27  ;;  %p2356_p4 = scmp.lt.s32.totalorder %s2354_s30, %s2350_s27 }
  0x5c   : > { %925 = vmatpush.bf16.msra.mxu1 %v1870_v27  ;;  %v1893_v27 = vld [vmem:[#allocation14 + $0x10] sm:$0xff] }
  0x5d   : > { %747 = vmatpush.msra.mxu0 %v2739_v6  ;;  %793 = vmatpush.msra.mxu2 %v2739_v6  ;;  %p2352_p1 = pnand %p2351_p0, %p2594_p5  ;;  %p2357_p7 = por %p2356_p4, %p2355_p3 }
  0x5f   : > { %748 = vmatpush.msra.mxu0 %v2746_v7  ;;  %794 = vmatpush.msra.mxu2 %v2746_v7  ;;  %p2353_p2 = pneg %p2352_p1 }
  0x60   : > { %926 = vmatpush.bf16.msra.mxu1 %v1869_v28 }
  0x61   : > { %749 = vmatpush.msra.mxu0 %v2753_v8  ;;  %795 = vmatpush.msra.mxu2 %v2753_v8  ;;  %p2358_p8 = pnand %p2357_p7, %p2353_p2 }
  0x63   : > { %750 = vmatpush.msra.mxu0 %v2761_v9  ;;  %796 = vmatpush.msra.mxu2 %v2761_v9 }
  0x64   : > { %927 = vmatpush.bf16.msra.mxu1 %v1868_v29 }
  0x65   : > { %751 = vmatpush.msra.mxu0 %v2768_v10  ;;  %797 = vmatpush.msra.mxu2 %v2768_v10 }
  0x67   : > { %752 = vmatpush.msra.mxu0 %v2776_v11  ;;  %798 = vmatpush.msra.mxu2 %v2776_v11 }
  0x68   : > { %928 = vmatpush.bf16.msra.mxu1 %v1867_v30  ;;  %v2056_v30 = vld [vmem:[#allocation8] ss:$0 sm:$0xff] }
  0x69   : > { %753 = vmatpush.msra.mxu0 %v2783_v12  ;;  %799 = vmatpush.msra.mxu2 %v2783_v12 }
  0x6b   : > { %754 = vmatpush.msra.mxu0 %v2790_v13  ;;  %800 = vmatpush.msra.mxu2 %v2790_v13 }
  0x6c   : > { %1064 = vmatpush.msrb.mxu1 %v2699_v0 }
  0x6d   : > { %755 = vmatpush.msra.mxu0 %v2797_v14  ;;  %801 = vmatpush.msra.mxu2 %v2797_v14 }
  0x6e   : > { %1065 = vmatpush.msrb.mxu1 %v2704_v1 }
  0x6f   : > { %756 = vmatpush.msra.mxu0 %v2807_v15  ;;  %802 = vmatpush.msra.mxu2 %v2807_v15 }
  0x70   : > { %757 = vmatmul.f32.vlgmr.msra.gmra.mxu0 %v2810_v16  ;;  %1066 = vmatpush.msrb.mxu1 %v2711_v2 }
  0x71   : > { %1019 = vmatpush.msrb.mxu0 %v2699_v0  ;;  %1057 = vmatpush.msrb.mxu2 %v738_v17 }
  0x72   : > { %1067 = vmatpush.msrb.mxu1 %v2718_v3 }
  0x73   : > { %1020 = vmatpush.msrb.mxu0 %v2704_v1 }
  0x74   : > { %1068 = vmatpush.msrb.mxu1 %v2724_v4 }
  0x75   : > { %1021 = vmatpush.msrb.mxu0 %v2711_v2 }
  0x76   : > { %1069 = vmatpush.msrb.mxu1 %v2732_v5 }
  0x77   : > { %1022 = vmatpush.msrb.mxu0 %v2718_v3 }
  0x78   : > { %1070 = vmatpush.msrb.mxu1 %v2739_v6 }
  0x79   : > { %1023 = vmatpush.msrb.mxu0 %v2724_v4 }
  0x7a   : > { %1071 = vmatpush.msrb.mxu1 %v2746_v7 }
  0x7b   : > { %1024 = vmatpush.msrb.mxu0 %v2732_v5 }
  0x7c   : > { %1072 = vmatpush.msrb.mxu1 %v2753_v8 }
  0x7d   : > { %1025 = vmatpush.msrb.mxu0 %v2739_v6 }
  0x7e   : > { %1073 = vmatpush.msrb.mxu1 %v2761_v9 }
  0x7f   : > { %1026 = vmatpush.msrb.mxu0 %v2746_v7  ;;  %v1890_v7 = vld [vmem:[#allocation11 + $0x38] sm:$0xff] }
  0x80   : > { %1074 = vmatpush.msrb.mxu1 %v2768_v10 }
  0x81   : > { %1027 = vmatpush.msrb.mxu0 %v2753_v8  ;;  %v1889_v8 = vld [vmem:[#allocation11 + $0x30] sm:$0xff] }
  0x82   : > { %1075 = vmatpush.msrb.mxu1 %v2776_v11 }
  0x83   : > { %1028 = vmatpush.msrb.mxu0 %v2761_v9  ;;  %v1888_v9 = vld [vmem:[#allocation11 + $0x28] sm:$0xff] }
  0x84   : > { %1076 = vmatpush.msrb.mxu1 %v2783_v12 }
  0x85   : > { %1029 = vmatpush.msrb.mxu0 %v2768_v10  ;;  %v1887_v10 = vld [vmem:[#allocation11 + $0x20] sm:$0xff] }
  0x86   : > { %1077 = vmatpush.msrb.mxu1 %v2790_v13 }
  0x87   : > { %1030 = vmatpush.msrb.mxu0 %v2776_v11  ;;  %v1886_v11 = vld [vmem:[#allocation11 + $0x18] sm:$0xff] }
  0x88   : > { %1078 = vmatpush.msrb.mxu1 %v2797_v14 }
  0x89   : > { %1031 = vmatpush.msrb.mxu0 %v2783_v12  ;;  %v1885_v12 = vld [vmem:[#allocation11 + $0x10] sm:$0xff] }
  0x8a   : > { %1079 = vmatpush.msrb.mxu1 %v2807_v15 }
  0x8b   : > { %1032 = vmatpush.msrb.mxu0 %v2790_v13  ;;  %v1884_v13 = vld [vmem:[#allocation11 + $0x8] sm:$0xff] }
  0x8d   : > { %1033 = vmatpush.msrb.mxu0 %v2797_v14  ;;  %v1883_v14 = vld [vmem:[#allocation11] sm:$0xff] }
  0x8f   : > { %1034 = vmatpush.msrb.mxu0 %v2807_v15  ;;  %v1898_v15 = vld [vmem:[#allocation14 + $0x38] sm:$0xff] }
  0xed   : > { %v758_v18 = vpop.f32.mrf.mxu0 }
  0xee   : > { %1665 = vmatmul.msk.f32.vlgmr.msra.gmra.mxu3 %vm761_vm0, %v758_v18  ;;  %v1897_v18 = vld [vmem:[#allocation14 + $0x30] sm:$0xff] }
  0xef   : > { %1003 = vmatpush.bf16.msra.mxu3 %v1882_v31 }
  0xf3   : > { %1004 = vmatpush.bf16.msra.mxu3 %v1881_v34 }
  0xf7   : > { %1005 = vmatpush.bf16.msra.mxu3 %v1880_v36 }
  0xfb   : > { %1006 = vmatpush.bf16.msra.mxu3 %v1879_v37  ;;  %v1892_v37 = vld [vmem:[#allocation14 + $0x8] sm:$0xff] }
  0xff   : > { %1007 = vmatpush.bf16.msra.mxu3 %v1878_v40  ;;  %v1914_v40 = vld [vmem:[%s3047_s15 + $0x74] sm:$0xf0] }
 0x103   : > { %1008 = vmatpush.bf16.msra.mxu3 %v1877_v43  ;;  %v1857_v43 = vld [vmem:[%s3047_s15 + $0x78] sm:$0xf0] }
 0x107   : > { %1009 = vmatpush.bf16.msra.mxu3 %v1876_v53  ;;  %v1909_v53 = vld [vmem:[%s3047_s15 + $0x54] sm:$0xf] }
 0x10b   : > { %1010 = vmatpush.bf16.msra.mxu3 %v1875_v54  ;;  %v1841_v54 = vld [vmem:[%s3047_s15 + $0x58] sm:$0xf0] }
 0x171   : > { %v782_v19 = vpop.f32.mrf.mxu3 }
 0x172   : > { %v2834_v20 = vsub.f32 %v2810_v16, %v782_v19 }
 0x174   : > { %v786_v21 = vmul.f32 %v2834_v20, %v2834_v20 }
 0x176   : > { %803 = vmatmul.f32.vlgmr.msra.gmra.mxu2 %v786_v21  ;;  %v1895_v21 = vld [vmem:[#allocation14 + $0x20] sm:$0xff] }
 0x177   : > { %1102 = vmatpush.msra.mxu2 %v738_v17 }
 0x1f9   : > { %v804_v22 = vpop.f32.mrf.mxu2 }
 0x1fa   : > { %1666 = vmatmul.msk.f32.vlgmr.msrb.gmra.mxu3 %vm761_vm0, %v804_v22 }
 0x1fb   : > { %1198 = vmatpush.bf16.msrb.mxu3 %v1890_v7  ;;  %v1904_v7 = vld [vmem:[%s3047_s15 + $0x24] sm:$0xf0] }
 0x1ff   : > { %1199 = vmatpush.bf16.msrb.mxu3 %v1889_v8  ;;  %v1903_v8 = vld [vmem:[%s3047_s15 + $0x24] sm:$0xf] }
 0x203   : > { %1200 = vmatpush.bf16.msrb.mxu3 %v1888_v9  ;;  %v1817_v9 = vld [vmem:[%s3047_s15 + $0x28] sm:$0xf0] }
 0x207   : > { %1201 = vmatpush.bf16.msrb.mxu3 %v1887_v10 }
 0x20b   : > { %1202 = vmatpush.bf16.msrb.mxu3 %v1886_v11  ;;  %v1820_v11 = vor.u32 %v1903_v8, %v1817_v9 }
 0x20f   : > { %1203 = vmatpush.bf16.msrb.mxu3 %v1885_v12  ;;  %v2058_v12 = vld [vmem:[#allocation13] ss:$0 sm:$0xff] }
 0x213   : > { %1204 = vmatpush.bf16.msrb.mxu3 %v1884_v13 }
 0x217   : > { %1205 = vmatpush.bf16.msrb.mxu3 %v1883_v14 }
 0x27d   : > { %v827_v32 = vpop.f32.mrf.mxu3 }
 0x27e   : > { %v830_v33 = vmax.f32 %v827_v32, 0.0 }
 0x280   : > { %v831_v35 = vadd.f32 1e-05, %v830_v33  ;;  %v2057_v33 = vld [vmem:[#allocation10] ss:$0 sm:$0xff] }
 0x282   : > { %2060 = vrsqrt.f32 %v831_v35  ;;  %vm838_vm2 = vweird.f32 %v831_v35 }
 0x288   : > { %v2061_v38 = vpop.eup %2060 }
 0x289   : > { %v833_v39 = vmul.f32 %v2061_v38, %v831_v35  ;;  %vm839_vm1 = vweird.f32 %v2061_v38 }
 0x28a   : > { %vm840_vm3 = vmor %vm838_vm2, %vm839_vm1 }
 0x28b   : > { %v834_v41 = vmul.f32 %v2061_v38, %v833_v39  ;;  %v1855_v39 = vld [vmem:[%s3047_s15 + $0x70] sm:$0xf] }
 0x28d   : > { %v835_v42 = vmul.f32 0.5, %v834_v41  ;;  %v1913_v41 = vld [vmem:[%s3047_s15 + $0x74] sm:$0xf] }
 0x28f   : > { %v836_v44 = vsub.f32 1.5, %v835_v42  ;;  %v1856_v42 = vor.u32 %v1914_v40, %v1855_v39 }
 0x291   : > { %v837_v45 = vmul.f32 %v2061_v38, %v836_v44  ;;  %v1847_v44 = vld [vmem:[%s3047_s15 + $0x60] sm:$0xf]  ;;  %1397 = vmatpush.bf16.msra.mxu0 %v1856_v42 }
 0x293   : > { %v841_v47 = vsel %vm840_vm3, %v2061_v38, %v837_v45  ;;  %v1891_v38 = vld [vmem:[#allocation14] sm:$0xff]  ;;  %v1912_v45 = vld [vmem:[%s3047_s15 + $0x64] sm:$0xf0] }
 0x294   : > { %v842_v48 = vmul.f32 %v841_v47, %v2834_v20  ;;  %v1896_v20 = vld [vmem:[#allocation14 + $0x28] sm:$0xff]  ;;  %v1911_v47 = vld [vmem:[%s3047_s15 + $0x64] sm:$0xf] }
 0x296   : > { %v846_v50 = vmul.f32 %v2052_v46, %v842_v48  ;;  %v1860_v46 = vor.u32 %v1913_v41, %v1857_v43  ;;  %v1849_v48 = vld [vmem:[%s3047_s15 + $0x68] sm:$0xf0] }
 0x298   : > { %v850_v51 = vadd.f32 %v2053_v49, %v846_v50  ;;  %v1848_v49 = vor.u32 %v1912_v45, %v1847_v44  ;;  %v1852_v50 = vor.u32 %v1911_v47, %v1849_v48 }
 0x29a   : > { %v853_v52 = vpack.c.bf16 %v850_v51, %v850_v51  ;;  %v1839_v51 = vld [vmem:[%s3047_s15 + $0x50] sm:$0xf]  ;;  %1398 = vmatpush.bf16.msra.mxu0 %v1848_v49 }
 0x29c   : > { %929 = vmatmul.bf16.vlgmr.msra.gmra.mxu1 %v853_v52  ;;  %v1910_v52 = vld [vmem:[%s3047_s15 + $0x54] sm:$0xf0] }
 0x29d   : > { %1410 = vmatpush.bf16.msra.mxu1 %v1860_v46 }
 0x2a1   : > { %1411 = vmatpush.bf16.msra.mxu1 %v1852_v50 }
 0x319   : > { %v930_v56 = vpop.f32.mrf.mxu1 }
 0x31a   : > { %v931_v57 = vadd.f32 %v2054_v55, %v930_v56  ;;  %v1840_v55 = vor.u32 %v1910_v52, %v1839_v51  ;;  %v1844_v56 = vor.u32 %v1909_v53, %v1841_v54 }
 0x31c   : > { %v934_v58 = vmax.f32 %v931_v57, 0.0  ;;  %v1831_v57 = vld [vmem:[%s3047_s15 + $0x40] sm:$0xf]  ;;  %1399 = vmatpush.bf16.msra.mxu0 %v1840_v55  ;;  %1412 = vmatpush.bf16.msra.mxu1 %v1844_v56 }
 0x31e   : > { %v935_v59 = vpack.c.bf16 %v934_v58, %v934_v58  ;;  %v1908_v58 = vld [vmem:[%s3047_s15 + $0x44] sm:$0xf0] }
 0x320   : > { %1011 = vmatmul.bf16.vlgmr.msra.gmra.mxu3 %v935_v59  ;;  %v1907_v59 = vld [vmem:[%s3047_s15 + $0x44] sm:$0xf] }
 0x321   : > { %v932_v60 = vpop.f32.mrf.mxu1 }
 0x322   : > { %v1833_v60 = vld [vmem:[%s3047_s15 + $0x48] sm:$0xf0] }
 0x3a3   : > { %v1012_v62 = vpop.f32.mrf.mxu3 }
 0x3a4   : > { %v1013_v63 = vadd.f32 %v2055_v61, %v1012_v62  ;;  %v1832_v61 = vor.u32 %v1908_v58, %v1831_v57  ;;  %v1836_v62 = vor.u32 %v1907_v59, %v1833_v60 }
 0x3a6   : > { %v2869_v0 = vadd.f32 %v1013_v63, %v2810_v16  ;;  %v1823_v63 = vld [vmem:[%s3047_s15 + $0x30] sm:$0xf]  ;;  %1400 = vmatpush.bf16.msra.mxu0 %v1832_v61  ;;  %1413 = vmatpush.bf16.msra.mxu1 %v1836_v62 }
 0x3a8   : > { %1035 = vmatmul.f32.vlgmr.msrb.gmra.mxu0 %v2869_v0 }
 0x3ab   : > { %v1014_v1 = vpop.f32.mrf.mxu3 }
 0x3ac   : > { %v1906_v1 = vld [vmem:[%s3047_s15 + $0x34] sm:$0xf0] }
 0x425   : > { %v1036_v2 = vpop.f32.mrf.mxu0 }
 0x426   : > { %1731 = vmatmul.msk.f32.vlgmr.msrb.gmra.mxu2 %vm761_vm0, %v1036_v2  ;;  %v1905_v2 = vld [vmem:[%s3047_s15 + $0x34] sm:$0xf] }
 0x427   : > { %1280 = vmatpush.bf16.msrb.mxu2 %v1898_v15 }
 0x42b   : > { %1281 = vmatpush.bf16.msrb.mxu2 %v1897_v18  ;;  %v1807_v18 = vld [vmem:[%s3047_s15 + $0x10] sm:$0xf] }
 0x42f   : > { %1282 = vmatpush.bf16.msrb.mxu2 %v1896_v20  ;;  %v1901_v20 = vld [vmem:[%s3047_s15 + $0x14] sm:$0xf] }
 0x433   : > { %1283 = vmatpush.bf16.msrb.mxu2 %v1895_v21 }
 0x437   : > { %1284 = vmatpush.bf16.msrb.mxu2 %v1894_v24  ;;  %v1799_v24 = vld [vmem:[%s3047_s15] sm:$0xf] }
 0x43b   : > { %1285 = vmatpush.bf16.msrb.mxu2 %v1893_v27 }
 0x43f   : > { %1286 = vmatpush.bf16.msrb.mxu2 %v1892_v37 }
 0x443   : > { %1287 = vmatpush.bf16.msrb.mxu2 %v1891_v38 }
 0x4a9   : > { %v1059_v3 = vpop.f32.mrf.mxu2 }
 0x4aa   : > { %v1062_v4 = vsub.f32 %v2869_v0, %v1059_v3  ;;  %v1825_v3 = vld [vmem:[%s3047_s15 + $0x38] sm:$0xf0] }
 0x4ac   : > { %v1063_v5 = vmul.f32 %v1062_v4, %v1062_v4 }
 0x4ae   : > { %1080 = vmatmul.f32.vlgmr.msrb.gmra.mxu1 %v1063_v5  ;;  %v1828_v5 = vor.u32 %v1905_v2, %v1825_v3 }
 0x4b0   : > { %1414 = vmatpush.bf16.msra.mxu1 %v1828_v5 }
 0x4b4   : > { %1415 = vmatpush.bf16.msra.mxu1 %v1820_v11 }
 0x52b   : > { %v1081_v6 = vpop.f32.mrf.mxu1 }
 0x52c   : > { %1732 = vmatmul.msk.f32.vlgmr.msra.gmra.mxu2 %vm761_vm0, %v1081_v6  ;;  %v1815_v6 = vld [vmem:[%s3047_s15 + $0x20] sm:$0xf] }
 0x52d   : > { %v1816_v10 = vor.u32 %v1904_v7, %v1815_v6 }
 0x5af   : > { %v1104_v16 = vpop.f32.mrf.mxu2 }
 0x5b0   : > { %v1107_v17 = vmax.f32 %v1104_v16, 0.0 }
 0x5b2   : > { %v1108_v19 = vadd.f32 1e-05, %v1107_v17 }
 0x5b4   : > { %2062 = vrsqrt.f32 %v1108_v19  ;;  %vm1115_vm5 = vweird.f32 %v1108_v19 }
 0x5ba   : > { %v2063_v22 = vpop.eup %2062 }
 0x5bb   : > { %v1110_v23 = vmul.f32 %v2063_v22, %v1108_v19  ;;  %vm1116_vm4 = vweird.f32 %v2063_v22  ;;  %v1902_v19 = vld [vmem:[%s3047_s15 + $0x14] sm:$0xf0] }
 0x5bc   : > { %vm1117_vm6 = vmor %vm1115_vm5, %vm1116_vm4  ;;  %v1808_v21 = vor.u32 %v1902_v19, %v1807_v18 }
 0x5bd   : > { %v1111_v25 = vmul.f32 %v2063_v22, %v1110_v23 }
 0x5bf   : > { %v1112_v26 = vmul.f32 0.5, %v1111_v25  ;;  %v1900_v25 = vld [vmem:[%s3047_s15 + $0x4] sm:$0xf0] }
 0x5c0   : > { %v1800_v27 = vor.u32 %v1900_v25, %v1799_v24 }
 0x5c1   : > { %v1113_v28 = vsub.f32 1.5, %v1112_v26  ;;  %v1899_v26 = vld [vmem:[%s3047_s15 + $0x4] sm:$0xf] }
 0x5c3   : > { %v1114_v29 = vmul.f32 %v2063_v22, %v1113_v28  ;;  %v1801_v28 = vld [vmem:[%s3047_s15 + $0x8] sm:$0xf0] }
 0x5c5   : > { %v1118_v31 = vsel %vm1117_vm6, %v2063_v22, %v1114_v29  ;;  %v1809_v22 = vld [vmem:[%s3047_s15 + $0x18] sm:$0xf0]  ;;  %v1804_v29 = vor.u32 %v1899_v26, %v1801_v28 }
 0x5c6   : > { %v1119_v32 = vmul.f32 %v1118_v31, %v1062_v4  ;;  %v1824_v4 = vor.u32 %v1906_v1, %v1823_v63  ;;  %v1812_v23 = vor.u32 %v1901_v20, %v1809_v22 }
 0x5c8   : > { %v1123_v34 = vmul.f32 %v2056_v30, %v1119_v32  ;;  %1401 = vmatpush.bf16.msra.mxu0 %v1824_v4  ;;  %1416 = vmatpush.bf16.msra.mxu1 %v1812_v23  ;;  %v2059_v30 = vld [vmem:[#allocation16] ss:$0 sm:$0xff] }
 0x5ca   : > { %v1127_v35 = vadd.f32 %v2057_v33, %v1123_v34 }
 0x5cc   : > { %v1130_v36 = vpack.c.bf16 %v1127_v35, %v1127_v35  ;;  %1402 = vmatpush.bf16.msra.mxu0 %v1816_v10  ;;  %1417 = vmatpush.bf16.msra.mxu1 %v1804_v29 }
 0x5ce   : > { %1206 = vmatmul.bf16.vlgmr.msrb.gmra.mxu3 %v1130_v36  ;;  %v1311_v36 = vld [vmem:[%s3048_s16] sm:$0x3] }
 0x5cf   : > { %v1314_v37 = vperm.slane %v1311_v36, 1 }
 0x5d0   : > { %1403 = vmatpush.bf16.msra.mxu0 %v1808_v21 }
 0x5d4   : > { %1404 = vmatpush.bf16.msra.mxu0 %v1800_v27 }
 0x651   : > { %v1207_v13 = vpop.f32.mrf.mxu3 }
 0x652   : > { %v1208_v14 = vadd.f32 %v2058_v12, %v1207_v13 }
 0x654   : > { %v1211_v15 = vmax.f32 %v1208_v14, 0.0 }
 0x656   : > { %v1212_v16 = vpack.c.bf16 %v1211_v15, %v1211_v15 }
 0x658   : > { %1288 = vmatmul.bf16.vlgmr.msrb.gmra.mxu2 %v1212_v16 }
 0x659   : > { %v1209_v17 = vpop.f32.mrf.mxu3 }
 0x6db   : > { %v1289_v31 = vpop.f32.mrf.mxu2 }
 0x6dc   : > { %v1290_v32 = vadd.f32 %v2059_v30, %v1289_v31 }
 0x6de   : > { %v1293_v33 = vadd.f32 %v1290_v32, %v2869_v0  ;;  %v1313_v0 = vperm.slane %v1311_v36, 0 }
 0x6e0   : > { %v1294_v34 = vpack.c.bf16 %v1293_v33, %v1293_v33 }
 0x6e2   : > { %1405 = vmatmul.bf16.vlgmr.msra.gmra.mxu0 %v1294_v34  ;;  %1418 = vmatmul.bf16.vlgmr.msra.gmra.mxu1 %v1294_v34 }
 0x6e3   : > { %v1291_v35 = vpop.f32.mrf.mxu2 }
 0x75f   : > { %v1406_v38 = vpop.f32.mrf.mxu0  ;;  %v1419_v39 = vpop.f32.mrf.mxu1 }
 0x760   : > { %v1407_v40 = vadd.f32 %v1406_v38, %v1313_v0  ;;  %v1420_v41 = vadd.f32 %v1419_v39, %v1314_v37 }
 0x762   : > { %1423 = vst [vmem:[%s709_s19] sm:$0xff] %v1407_v40 }
 0x763   : > { %1424 = vst [vmem:[%s716_s0] sm:$0xff] %v1420_v41 }
 0x764   : > { %2361 = shalt.err (!%p2358_p8)
}
 0x765   : > { %1951 = dma.vmem_to_hbm [thread:$0]  (%p2594_p5), %s1444_s21, 128, %s1446_s25, %s1426_s22  }
 0x766   : > { %s1431_s1 = scalar_lea.sflag [#allocation19], %s2973_s26  ;;  %s2376_s2 = sshra.s32 %s2988_s4, 4  ;;  %s2377_s2 = int_to_ptr.hbm [resolvable:$true] %s2376_s2 }
 0x767   : > { %s2378_s19 = scalar_lea.hbm %s2377_s2, 8  ;;  %s2382_s27 = scalar_lea.hbm %s3093_s17, 16 }
 0x768   : > { %p2379_p9 = scmp.ne.s32.totalorder %s2377_s2, %s2378_s19  ;;  %p2383_p12 = scmp.lt.s32.totalorder %s2377_s2, %s3093_s17 }
 0x769   : > { %p2384_p13 = scmp.lt.s32.totalorder %s2382_s27, %s2378_s19 }
 0x76a   : > { %p2380_p10 = pnand %p2379_p9, %p2594_p5 }
 0x76b   : > { %p2385_p0 = por %p2384_p13, %p2383_p12 }
 0x76c   : > { %p2381_p11 = pneg %p2380_p10 }
 0x76e   : > { %p2386_p1 = pnand %p2385_p0, %p2381_p11 }
 0x770   : > { %2389 = shalt.err (!%p2386_p1)
}
 0x771   : > { %1952 = dma.vmem_to_hbm [thread:$0]  (%p2594_p5), %s2986_s3, 128, %s2988_s4, %s1431_s1   ;;  %v1408_v42 = vpop.f32.mrf.mxu0  ;;  %v1421_v43 = vpop.f32.mrf.mxu1 }
 0x772 PF: > { %s3095_s26 = sld [smem:[#allocation29_spill]] }
 0x773   : > { %s3096_s21 = sld [smem:[#allocation27_spill]] }
 0x778   : > { %p2008_p2 = scmp.ge.s32.totalorder %s3095_s26, 2 }
 0x779   : > { %s1471_s22 = sand.u32 1, %s3096_s21  }
 0x77a   : > { %p1984_p3 = pnand %p2008_p2, %p2598_p6  ;;  %s1472_s30 = scalar_lea.sflag [#allocation4], %s1471_s22 }
 0x77c   : > { %p1985_p4 = pneg %p1984_p3 }
 0x77e   : > { %2427 = dma.done.wait (%p1985_p4), %s1472_s30, 128  }
 0x77f   : > { %2429 = vsyncadd (%p1985_p4), %s1472_s30, 4294967168  ;;  %s1482_s5 = scalar_lea.sflag [#allocation19], %s1471_s22 }
 0x780   : > { %2431 = dma.done.wait (%p1985_p4), %s1482_s5, 128  }
 0x781   : > { %2433 = vsyncadd (%p1985_p4), %s1482_s5, 4294967168  ;;  %s3098_s30 = sld [smem:[#allocation30_spill]]  ;;  %s3101_s27 = smov %s2440_s28 }
 0x782   : > { %s3099_s3 = sld [smem:[#allocation28_spill]] }
 0x783   : > { %s3100_s29 = sld [smem:[#allocation31_spill]] }
 0x787   : > { %p37_p5 = scmp.ge.s32.totalorder %s3098_s30, 4  }
 0x788   : > { %s3102_s28 = smov %s3099_s3 }
 0x789   :  { %39 = sbr.rel (!%p37_p5) target bundleno = 21 (0x15), region = 177 }
 0x78e   :  { %1488 = vsyncpa [#allocation3], 1 }
 0x78f   :  { %1490 = vsyncpa [#allocation3 + $0x1], 1 }
 0x790   :  { %1491 = vsyncpa [#allocation6], 1 }
 0x791   :  { %1492 = vsyncpa [#allocation9], 1 }
 0x792   :  { %1493 = vsyncpa [#allocation12], 1 }
 0x793   :  { %1494 = vsyncpa [#allocation15], 1 }
 0x794   :  { %1495 = vsyncpa [#allocation4], 1 }
 0x795   :  { %1497 = vsyncpa [#allocation4 + $0x1], 1 }
 0x796   :  { %1498 = vsyncpa [#allocation19], 1 }
 0x797   :  { %1500 = vsyncpa [#allocation19 + $0x1], 1 }

</bundles_post_ra>
